<compile_context>
chip_gen: v7x
topology: tpu7x:2x2x1
jax: 0.10.0
libtpu: 0.0.40
codegen_flags: <defaults>
</compile_context>

<pallas_src>
import functools

import jax
import jax.numpy as jnp
from jax.experimental import pallas as pl
from jax.experimental.pallas import tpu as pltpu


def _mlp_kernel(x_ref, w1_ref, b1_ref, w2_ref, b2_ref, w3_ref, b3_ref, o_ref):
    # Fused forward on one batch tile: 3 matmuls + bias adds + 2 ReLUs, all f32.
    x = x_ref[...]

    h1 = jnp.dot(x, w1_ref[...], preferred_element_type=jnp.float32) + b1_ref[...]
    h1 = jnp.maximum(h1, 0.0)                                    # relu1

    h2 = jnp.dot(h1, w2_ref[...], preferred_element_type=jnp.float32) + b2_ref[...]
    h2 = jnp.maximum(h2, 0.0)                                    # relu2

    out = jnp.dot(h2, w3_ref[...], preferred_element_type=jnp.float32) + b3_ref[...]
    o_ref[...] = out.astype(o_ref.dtype)


def _round_up(x, m):
    return ((x + m - 1) // m) * m


def detect_num_tensorcores():
    """Best-effort detection: v7x exposes 2 TensorCores/chip, older gens 1."""
    try:
        kind = jax.devices()[0].device_kind.lower()
    except Exception:  # pragma: no cover - CPU/interpret fallback
        return 1
    return 2 if "v7" in kind else 1


@functools.partial(jax.jit, static_argnames=("block_b", "num_tensorcores"))
def oversample_forward(x, w1, b1, w2, b2, w3, b3, *,
                       block_b=4096, num_tensorcores=1):
    """x: [B, n_inputs] f32; weights [in, out], biases [1, out] -> [B, 2] f32."""
    B, n_in = x.shape
    hidden = w2.shape[1]    # 32
    n_out = w3.shape[1]     # 2

    # Batch tile: as large as possible (amortizes per-step pipeline overhead,
    # bigger DMAs), multiple of 8.  Only when the chip has >=2 TensorCores
    # (v7x megacore) do we force a >=2-step balanced grid so both cores work.
    bb = min(block_b, _round_up(B, 8))
    if num_tensorcores >= 2 and B > 8:
        bb = min(bb, max(8, _round_up(pl.cdiv(B, 2), 8)))
    bb = max(bb, 8)

    grid = (pl.cdiv(B, bb),)

    return pl.pallas_call(
        _mlp_kernel,
        out_shape=jax.ShapeDtypeStruct((B, n_out), jnp.float32),
        grid=grid,
        in_specs=[
            # batch tile of x
            pl.BlockSpec((bb, n_in), lambda i: (i, 0)),
            # small weights / biases: grid-invariant full-array blocks
            pl.BlockSpec((n_in, n_in), lambda i: (0, 0)),
            pl.BlockSpec((1, n_in), lambda i: (0, 0)),
            pl.BlockSpec((n_in, hidden), lambda i: (0, 0)),
            pl.BlockSpec((1, hidden), lambda i: (0, 0)),
            pl.BlockSpec((hidden, n_out), lambda i: (0, 0)),
            pl.BlockSpec((1, n_out), lambda i: (0, 0)),
        ],
        # last dim == full array dim (2) is legal; write [B, 2] directly to HBM.
        out_specs=pl.BlockSpec((bb, n_out), lambda i: (i, 0)),
        compiler_params=pltpu.CompilerParams(
            dimension_semantics=("parallel",)),
    )(x, w1, b1, w2, b2, w3, b3)


def init_params(key, n_inputs, hidden=32, n_out=2):
    """Deterministic PyTorch-Linear-style init (uniform(-1/sqrt(fan_in), ..))."""
    ks = jax.random.split(key, 6)

    def lin(kw, kb, fan_in, fan_out):
        bound = 1.0 / jnp.sqrt(jnp.float32(fan_in))
        w = jax.random.uniform(kw, (fan_in, fan_out), jnp.float32, -bound, bound)
        b = jax.random.uniform(kb, (1, fan_out), jnp.float32, -bound, bound)
        return w, b

    w1, b1 = lin(ks[0], ks[1], n_inputs, n_inputs)
    w2, b2 = lin(ks[2], ks[3], n_inputs, hidden)
    w3, b3 = lin(ks[4], ks[5], hidden, n_out)
    return w1, b1, w2, b2, w3, b3


def reference_forward(x, w1, b1, w2, b2, w3, b3):
    h1 = jnp.maximum(x @ w1 + b1, 0.0)
    h2 = jnp.maximum(h1 @ w2 + b2, 0.0)
    return h2 @ w3 + b3


if __name__ == "__main__":
    key = jax.random.PRNGKey(0)
    k_x, k_p = jax.random.split(key)

    batch = 64
    n_inputs = 16

    x = jax.random.normal(k_x, (batch, n_inputs), jnp.float32)
    params = init_params(k_p, n_inputs)

    ref = reference_forward(x, *params)

    out = jax.block_until_ready(
        oversample_forward(x, *params,
                           num_tensorcores=detect_num_tensorcores()))
    assert out.shape == (batch, 2)
    assert jnp.allclose(out, ref, atol=1e-5, rtol=1e-5)

    print("KERNEL_OK")
</pallas_src>

<mosaic_0001>
module attributes {stable_mosaic.version = 11 : i64} {
  func.func @_mlp_kernel(%arg0: i32, %arg1: memref<64x16xf32, #tpu.memory_space<vmem>>, %arg2: memref<16x16xf32, #tpu.memory_space<vmem>>, %arg3: memref<1x16xf32, #tpu.memory_space<vmem>>, %arg4: memref<16x32xf32, #tpu.memory_space<vmem>>, %arg5: memref<1x32xf32, #tpu.memory_space<vmem>>, %arg6: memref<32x2xf32, #tpu.memory_space<vmem>>, %arg7: memref<1x2xf32, #tpu.memory_space<vmem>>, %arg8: memref<64x2xf32, #tpu.memory_space<vmem>>) attributes {dimension_semantics = [#tpu.dimension_semantics<parallel>], iteration_bounds = array<i64: 1>, scalar_prefetch = 0 : i64, scratch_operands = 0 : i64, tpu.core_type = #tpu.core_type<tc>, window_params = [{transform_indices = @transform_0, window_bounds = array<i64: 64, 16>}, {pipeline_mode = #tpu.pipeline_mode<synchronous>, transform_indices = @transform_1, window_bounds = array<i64: 16, 16>}, {pipeline_mode = #tpu.pipeline_mode<synchronous>, transform_indices = @transform_2, window_bounds = array<i64: 1, 16>}, {pipeline_mode = #tpu.pipeline_mode<synchronous>, transform_indices = @transform_3, window_bounds = array<i64: 16, 32>}, {pipeline_mode = #tpu.pipeline_mode<synchronous>, transform_indices = @transform_4, window_bounds = array<i64: 1, 32>}, {pipeline_mode = #tpu.pipeline_mode<synchronous>, transform_indices = @transform_5, window_bounds = array<i64: 32, 2>}, {pipeline_mode = #tpu.pipeline_mode<synchronous>, transform_indices = @transform_6, window_bounds = array<i64: 1, 2>}, {transform_indices = @transform_7, window_bounds = array<i64: 64, 2>}]} {
    %c0 = arith.constant 0 : index
    %c0_0 = arith.constant 0 : index
    %0 = vector.load %arg1[%c0, %c0_0] : memref<64x16xf32, #tpu.memory_space<vmem>>, vector<64x16xf32>
    %c0_1 = arith.constant 0 : index
    %c0_2 = arith.constant 0 : index
    %1 = vector.load %arg2[%c0_1, %c0_2] : memref<16x16xf32, #tpu.memory_space<vmem>>, vector<16x16xf32>
    %cst = arith.constant dense<0.000000e+00> : vector<64x16xf32>
    %2 = tpu.matmul %0, %1, %cst {dimension_numbers = #tpu.dot_dimension_numbers<[1], [0], [0], [1], [0, 0, 1, 1], [], []>} : vector<64x16xf32>, vector<16x16xf32>, vector<64x16xf32> -> vector<64x16xf32>
    %c0_3 = arith.constant 0 : index
    %c0_4 = arith.constant 0 : index
    %3 = vector.load %arg3[%c0_3, %c0_4] : memref<1x16xf32, #tpu.memory_space<vmem>>, vector<1x16xf32>
    %4 = vector.broadcast %3 : vector<1x16xf32> to vector<64x16xf32>
    %5 = arith.addf %2, %4 : vector<64x16xf32>
    %cst_5 = arith.constant 0.000000e+00 : f32
    %6 = vector.broadcast %cst_5 : f32 to vector<64x16xf32>
    %7 = arith.maximumf %5, %6 : vector<64x16xf32>
    %c0_6 = arith.constant 0 : index
    %c0_7 = arith.constant 0 : index
    %8 = vector.load %arg4[%c0_6, %c0_7] : memref<16x32xf32, #tpu.memory_space<vmem>>, vector<16x32xf32>
    %cst_8 = arith.constant dense<0.000000e+00> : vector<64x32xf32>
    %9 = tpu.matmul %7, %8, %cst_8 {dimension_numbers = #tpu.dot_dimension_numbers<[1], [0], [0], [1], [0, 0, 1, 1], [], []>} : vector<64x16xf32>, vector<16x32xf32>, vector<64x32xf32> -> vector<64x32xf32>
    %c0_9 = arith.constant 0 : index
    %c0_10 = arith.constant 0 : index
    %10 = vector.load %arg5[%c0_9, %c0_10] : memref<1x32xf32, #tpu.memory_space<vmem>>, vector<1x32xf32>
    %11 = vector.broadcast %10 : vector<1x32xf32> to vector<64x32xf32>
    %12 = arith.addf %9, %11 : vector<64x32xf32>
    %cst_11 = arith.constant 0.000000e+00 : f32
    %13 = vector.broadcast %cst_11 : f32 to vector<64x32xf32>
    %14 = arith.maximumf %12, %13 : vector<64x32xf32>
    %c0_12 = arith.constant 0 : index
    %c0_13 = arith.constant 0 : index
    %15 = vector.load %arg6[%c0_12, %c0_13] : memref<32x2xf32, #tpu.memory_space<vmem>>, vector<32x2xf32>
    %cst_14 = arith.constant dense<0.000000e+00> : vector<64x2xf32>
    %16 = tpu.matmul %14, %15, %cst_14 {dimension_numbers = #tpu.dot_dimension_numbers<[1], [0], [0], [1], [0, 0, 1, 1], [], []>} : vector<64x32xf32>, vector<32x2xf32>, vector<64x2xf32> -> vector<64x2xf32>
    %c0_15 = arith.constant 0 : index
    %c0_16 = arith.constant 0 : index
    %17 = vector.load %arg7[%c0_15, %c0_16] : memref<1x2xf32, #tpu.memory_space<vmem>>, vector<1x2xf32>
    %18 = vector.broadcast %17 : vector<1x2xf32> to vector<64x2xf32>
    %19 = arith.addf %16, %18 : vector<64x2xf32>
    %c0_17 = arith.constant 0 : index
    %c0_18 = arith.constant 0 : index
    %20 = vector.load %arg8[%c0_17, %c0_18] : memref<64x2xf32, #tpu.memory_space<vmem>>, vector<64x2xf32>
    tpu.vector_store %arg8[%c0_17, %c0_18], %19 {strides = array<i32>} : memref<64x2xf32, #tpu.memory_space<vmem>>, vector<64x2xf32>,
    return
  }
  func.func @transform_0(%arg0: i32) -> (i32, i32) {
    %c0_i32 = arith.constant 0 : i32
    %c0_i32_0 = arith.constant 0 : i32
    return %arg0, %c0_i32 : i32, i32
  }
  func.func @transform_1(%arg0: i32) -> (i32, i32) {
    %c0_i32 = arith.constant 0 : i32
    %c0_i32_0 = arith.constant 0 : i32
    %c0_i32_1 = arith.constant 0 : i32
    return %c0_i32, %c0_i32_0 : i32, i32
  }
  func.func @transform_2(%arg0: i32) -> (i32, i32) {
    %c0_i32 = arith.constant 0 : i32
    %c0_i32_0 = arith.constant 0 : i32
    %c0_i32_1 = arith.constant 0 : i32
    return %c0_i32, %c0_i32_0 : i32, i32
  }
  func.func @transform_3(%arg0: i32) -> (i32, i32) {
    %c0_i32 = arith.constant 0 : i32
    %c0_i32_0 = arith.constant 0 : i32
    %c0_i32_1 = arith.constant 0 : i32
    return %c0_i32, %c0_i32_0 : i32, i32
  }
  func.func @transform_4(%arg0: i32) -> (i32, i32) {
    %c0_i32 = arith.constant 0 : i32
    %c0_i32_0 = arith.constant 0 : i32
    %c0_i32_1 = arith.constant 0 : i32
    return %c0_i32, %c0_i32_0 : i32, i32
  }
  func.func @transform_5(%arg0: i32) -> (i32, i32) {
    %c0_i32 = arith.constant 0 : i32
    %c0_i32_0 = arith.constant 0 : i32
    %c0_i32_1 = arith.constant 0 : i32
    return %c0_i32, %c0_i32_0 : i32, i32
  }
  func.func @transform_6(%arg0: i32) -> (i32, i32) {
    %c0_i32 = arith.constant 0 : i32
    %c0_i32_0 = arith.constant 0 : i32
    %c0_i32_1 = arith.constant 0 : i32
    return %c0_i32, %c0_i32_0 : i32, i32
  }
  func.func @transform_7(%arg0: i32) -> (i32, i32) {
    %c0_i32 = arith.constant 0 : i32
    %c0_i32_0 = arith.constant 0 : i32
    return %arg0, %c0_i32 : i32, i32
  }
}

</mosaic_0001>

<bundles_post_ra>
// kernel: oversample_forward.1
= control target key start
LH: loop header
LB: loop body
LE: loop exit
PB: predicated region body
PF: predicated region fallthrough
CT: control target
= control target key end

     0   :  { %vm43_vm0 = vcmask 130048   ;;  %vm338_vm1 = vcmask 261120   ;;  %vm468_vm2 = vcmask 15360   ;;  %s763_s1 = inlined_call_operand.vmem [shape: f32[16,16], index: 1, kind: input, shape index: {}]   ;;  %s764_s0 = inlined_call_operand.vmem [shape: f32[64,16], index: 0, kind: input, shape index: {}]   ;;  %s765_s3 = inlined_call_operand.vmem [shape: f32[16,32], index: 3, kind: input, shape index: {}]   ;;  %s766_s5 = inlined_call_operand.vmem [shape: f32[32,2], index: 5, kind: input, shape index: {}]   ;;  %s767_s2 = inlined_call_operand.vmem [shape: f32[1,16], index: 2, kind: input, shape index: {}]   ;;  %s768_s4 = inlined_call_operand.vmem [shape: f32[1,32], index: 4, kind: input, shape index: {}]   ;;  %s769_s6 = inlined_call_operand.vmem [shape: f32[1,2], index: 6, kind: input, shape index: {}]   ;;  %s770_s7 = inlined_call_operand.vmem [shape: f32[64,2], index: 7, kind: output, shape index: {}]  }
   0x1   :  { %v34_v0 = vld [vmem:[%s763_s1] sm:$0xff]  ;;  %v35_v1 = vld [vmem:[%s763_s1 + $0x8] sm:$0xff]  ;;  %v28_v10 = vld [vmem:[%s764_s0 + $0x10] sm:$0xff] }
   0x2   :  { %v26_v2 = vld [vmem:[%s764_s0] sm:$0xff]  ;;  %v592_v3 = vpack.c.bf16 %v35_v1, %v34_v0  ;;  %v182_v6 = vld [vmem:[%s765_s3 + $0x8] sm:$0xff]  ;;  %v32_v11 = vld [vmem:[%s764_s0 + $0x30] sm:$0xff] }
   0x3   :  { %544 = vmatprep.mubr.msk.f32.mxu0 %vm43_vm0, %v26_v2  ;;  %v30_v4 = vld [vmem:[%s764_s0 + $0x20] sm:$0xff]  ;;  %v27_v7 = vld [vmem:[%s764_s0 + $0x8] sm:$0xff]  ;;  %v29_v12 = vld [vmem:[%s764_s0 + $0x18] sm:$0xff] }
   0x4   :  { %593 = vmatprep.subr.bf16.mxu0 %v592_v3  ;;  %608 = vmatprep.subr.bf16.mxu1 %v592_v3  ;;  %v181_v5 = vld [vmem:[%s765_s3] sm:$0xff]  ;;  %v31_v8 = vld [vmem:[%s764_s0 + $0x28] sm:$0xff]  ;;  %v33_v13 = vld [vmem:[%s764_s0 + $0x38] sm:$0xff] }
   0x5   :  { %595 = vmatpush3.bf16.msra.mxu0 %v592_v3  ;;  %609 = vmatpush3.bf16.msra.mxu1 %v592_v3  ;;  %v596_v9 = vpack.c.bf16 %v182_v6, %v181_v5  ;;  %v327_v14 = vld [vmem:[%s766_s5] sm:$0xff]  ;;  %v328_v15 = vld [vmem:[%s766_s5 + $0x8] sm:$0xff]  ;;  %v329_v42 = vld [vmem:[%s766_s5 + $0x10] sm:$0xff] }
   0x6   :  { %550 = vmatprep.mubr.msk.f32.mxu1 %vm43_vm0, %v30_v4  ;;  %v600_v16 = vpack.c.bf16 %v328_v15, %v327_v14  ;;  %v481_v17 = vld [vmem:[%s767_s2] ss:$0 sm:$0xff]  ;;  %v330_v43 = vld [vmem:[%s766_s5 + $0x18] sm:$0xff] }
   0x7   :  { %597 = vmatprep.subr.bf16.mxu1 %v596_v9  ;;  %v604_v44 = vpack.c.bf16 %v330_v43, %v329_v42  ;;  %v490_v45 = vld [vmem:[%s768_s4] ss:$0 sm:$0xff] }
   0x8   :  { %545 = vmatmul.mubr.msk.f32.vlgmr.msra.gmra.mrb[0].mxu0 %vm43_vm0, %v27_v7  ;;  %551 = vmatmul.mubr.msk.f32.vlgmr.msra.gmra.mrb[0].mxu1 %vm43_vm0, %v31_v8  ;;  %v499_v6 = vld [vmem:[%s769_s6] ss:$0 sm:$0xff] }
   0x9   :  { %547 = vmatprep.mubr.msk.f32.mxu0 %vm43_vm0, %v28_v10  ;;  %553 = vmatprep.mubr.msk.f32.mxu1 %vm43_vm0, %v32_v11 }
   0xa   :  { %599 = vmatpush3.bf16.msra.mxu1 %v596_v9  ;;  %601 = vmatprep.subr.bf16.mxu0 %v600_v16 }
   0xb   :  { %603 = vmatpush3.bf16.msra.mxu0 %v600_v16 }
   0xc   :  { %548 = vmatmul.mubr.msk.f32.gmra.mrb[2].mxu0 %vm43_vm0, %v29_v12  ;;  %554 = vmatmul.mubr.msk.f32.gmra.mrb[2].mxu1 %vm43_vm0, %v33_v13 }
   0xd   :  { %605 = vmatprep.subr.bf16.mxu0 %v604_v44 }
   0xf   :  { %607 = vmatpush3.bf16.msra.mxu0 %v604_v44 }
  0xdb   :  { %v546_v18 = vpop.f32.mrb[0].mxu0  ;;  %v552_v19 = vpop.f32.mrb[0].mxu1 }
  0xdc   :  { %v140_v20 = vadd.f32 %v546_v18, %v481_v17  ;;  %v134_v21 = vpop.f32.mrb[1].mxu0  ;;  %v154_v22 = vpop.f32.mrb[1].mxu1  ;;  %v160_v37 = vadd.f32 %v552_v19, %v481_v17 }
  0xdd   :  { %v135_v23 = vadd.f32 %v481_v17, %v134_v21  ;;  %v155_v26 = vadd.f32 %v481_v17, %v154_v22 }
  0xde   :  { %v174_v28 = vmax.f32 %v140_v20, 0.0  ;;  %v178_v39 = vmax.f32 %v160_v37, 0.0 }
  0xdf   :  { %v173_v24 = vmax.f32 %v135_v23, 0.0  ;;  %v549_v25 = vpop.f32.mrb[2].mxu0  ;;  %v555_v27 = vpop.f32.mrb[2].mxu1  ;;  %v177_v34 = vmax.f32 %v155_v26, 0.0 }
  0xe0   :  { %v150_v29 = vadd.f32 %v549_v25, %v481_v17  ;;  %v144_v30 = vpop.f32.mrb[3].mxu0  ;;  %v164_v31 = vpop.f32.mrb[3].mxu1  ;;  %v170_v40 = vadd.f32 %v555_v27, %v481_v17 }
  0xe1   :  { %v145_v32 = vadd.f32 %v481_v17, %v144_v30  ;;  %560 = vmatprep.mubr.msk.f32.mxu1 %vm43_vm0, %v173_v24  ;;  %v165_v35 = vadd.f32 %v481_v17, %v164_v31 }
  0xe2   :  { %561 = vmatmul.mubr.msk.f32.vlgmr.msra.gmra.mrb[4].mxu1 %vm43_vm0, %v174_v28  ;;  %v176_v36 = vmax.f32 %v150_v29, 0.0  ;;  %v180_v41 = vmax.f32 %v170_v40, 0.0 }
  0xe3   :  { %v175_v33 = vmax.f32 %v145_v32, 0.0  ;;  %v179_v38 = vmax.f32 %v165_v35, 0.0 }
  0xe5   :  { %563 = vmatprep.mubr.msk.f32.mxu1 %vm43_vm0, %v175_v33 }
  0xe6   :  { %564 = vmatmul.mubr.msk.f32.gmra.mrb[6].mxu1 %vm43_vm0, %v176_v36 }
  0xe7   :  { %566 = vmatprep.mubr.msk.f32.mxu1 %vm43_vm0, %v177_v34 }
  0xea   :  { %567 = vmatmul.mubr.msk.f32.gmra.mrb[8].mxu1 %vm43_vm0, %v178_v39 }
  0xeb   :  { %569 = vmatprep.mubr.msk.f32.mxu1 %vm43_vm0, %v179_v38 }
  0xee   :  { %570 = vmatmul.mubr.msk.f32.gmra.mrb[10].mxu1 %vm43_vm0, %v180_v41 }
 0x1b5   :  { %v562_v46 = vpop.f32.mrb[4].mxu1 }
 0x1b6   :  { %v286_v47 = vadd.f32 %v562_v46, %v490_v45  ;;  %v280_v48 = vpop.f32.mrb[5].mxu1 }
 0x1b7   :  { %v281_v49 = vadd.f32 %v490_v45, %v280_v48 }
 0x1b8   :  { %v320_v52 = vmax.f32 %v286_v47, 0.0 }
 0x1b9   :  { %v319_v50 = vmax.f32 %v281_v49, 0.0  ;;  %v565_v51 = vpop.f32.mrb[6].mxu1 }
 0x1ba   :  { %v296_v53 = vadd.f32 %v565_v51, %v490_v45  ;;  %v290_v54 = vpop.f32.mrb[7].mxu1 }
 0x1bb   :  { %v291_v55 = vadd.f32 %v490_v45, %v290_v54  ;;  %580 = vmatprep.mubr.msk.f32.mxu0 %vm338_vm1, %v319_v50 }
 0x1bc   :  { %581 = vmatmul.mubr.msk.f32.vlgmr.msra.gmra.mrb[4].mxu0 %vm338_vm1, %v320_v52  ;;  %v322_v58 = vmax.f32 %v296_v53, 0.0 }
 0x1bd   :  { %v321_v56 = vmax.f32 %v291_v55, 0.0  ;;  %v568_v57 = vpop.f32.mrb[8].mxu1 }
 0x1be   :  { %v306_v59 = vadd.f32 %v568_v57, %v490_v45  ;;  %v300_v60 = vpop.f32.mrb[9].mxu1 }
 0x1bf   :  { %v301_v61 = vadd.f32 %v490_v45, %v300_v60  ;;  %583 = vmatprep.mubr.msk.f32.mxu0 %vm338_vm1, %v321_v56 }
 0x1c0   :  { %584 = vmatmul.mubr.msk.f32.gmra.mrb[6].mxu0 %vm338_vm1, %v322_v58  ;;  %v324_v0 = vmax.f32 %v306_v59, 0.0 }
 0x1c1   :  { %v323_v62 = vmax.f32 %v301_v61, 0.0  ;;  %v571_v63 = vpop.f32.mrb[10].mxu1 }
 0x1c2   :  { %v316_v1 = vadd.f32 %v571_v63, %v490_v45  ;;  %v310_v2 = vpop.f32.mrb[11].mxu1 }
 0x1c3   :  { %v311_v3 = vadd.f32 %v490_v45, %v310_v2  ;;  %586 = vmatprep.mubr.msk.f32.mxu0 %vm338_vm1, %v323_v62 }
 0x1c4   :  { %587 = vmatmul.mubr.msk.f32.gmra.mrb[8].mxu0 %vm338_vm1, %v324_v0  ;;  %v326_v5 = vmax.f32 %v316_v1, 0.0 }
 0x1c5   :  { %v325_v4 = vmax.f32 %v311_v3, 0.0 }
 0x1c7   :  { %589 = vmatprep.mubr.msk.f32.mxu0 %vm338_vm1, %v325_v4 }
 0x1c8   :  { %590 = vmatmul.mubr.msk.f32.gmra.mrb[10].mxu0 %vm338_vm1, %v326_v5 }
 0x28f   :  { %v582_v7 = vpop.f32.mrb[4].mxu0 }
 0x290   :  { %v435_v8 = vadd.f32 %v582_v7, %v499_v6  ;;  %v429_v9 = vpop.f32.mrb[5].mxu0 }
 0x291   :  { %v430_v10 = vadd.f32 %v499_v6, %v429_v9 }
 0x292   :  { %470 = vst.msk [vmem:[%s770_s7 + $0x8] sm:$0xff] %vm468_vm2, %v435_v8 }
 0x293   :  { %469 = vst.msk [vmem:[%s770_s7] sm:$0xff] %vm468_vm2, %v430_v10  ;;  %v585_v11 = vpop.f32.mrb[6].mxu0 }
 0x294   :  { %v445_v12 = vadd.f32 %v585_v11, %v499_v6  ;;  %v439_v13 = vpop.f32.mrb[7].mxu0 }
 0x295   :  { %v440_v14 = vadd.f32 %v499_v6, %v439_v13 }
 0x296   :  { %472 = vst.msk [vmem:[%s770_s7 + $0x18] sm:$0xff] %vm468_vm2, %v445_v12 }
 0x297   :  { %471 = vst.msk [vmem:[%s770_s7 + $0x10] sm:$0xff] %vm468_vm2, %v440_v14  ;;  %v588_v15 = vpop.f32.mrb[8].mxu0 }
 0x298   :  { %v455_v16 = vadd.f32 %v588_v15, %v499_v6  ;;  %v449_v17 = vpop.f32.mrb[9].mxu0 }
 0x299   :  { %v450_v18 = vadd.f32 %v499_v6, %v449_v17 }
 0x29a   :  { %474 = vst.msk [vmem:[%s770_s7 + $0x28] sm:$0xff] %vm468_vm2, %v455_v16 }
 0x29b   :  { %473 = vst.msk [vmem:[%s770_s7 + $0x20] sm:$0xff] %vm468_vm2, %v450_v18  ;;  %v591_v19 = vpop.f32.mrb[10].mxu0 }
 0x29c   :  { %v465_v20 = vadd.f32 %v591_v19, %v499_v6  ;;  %v459_v21 = vpop.f32.mrb[11].mxu0 }
 0x29d   :  { %v460_v22 = vadd.f32 %v499_v6, %v459_v21 }
 0x29e   :  { %476 = vst.msk [vmem:[%s770_s7 + $0x38] sm:$0xff] %vm468_vm2, %v465_v20 }
 0x29f   :  { %475 = vst.msk [vmem:[%s770_s7 + $0x30] sm:$0xff] %vm468_vm2, %v460_v22 }

</bundles_post_ra>
